<compile_context>
chip_gen: v7x
topology: tpu7x:2x2x1
jax: 0.10.0
libtpu: 0.0.40
codegen_flags: <defaults>
</compile_context>

<pallas_src>
import functools

import jax
import jax.numpy as jnp
from jax.experimental import pallas as pl
from jax.experimental.pallas import tpu as pltpu

_LANE = 128          # TPU lane width (last-dim tiling unit)
_SUBLANE = 8         # TPU sublane width (second-to-last-dim tiling unit)
_NEG_BIG = -1e30     # bias for padded output columns -> exp() underflows to 0


def _round_up(x: int, m: int) -> int:
    return (x + m - 1) // m * m


def _min_batch_tiles() -> int:
    """1 on single-TensorCore chips (v5e/v6e), 2 on dual-TC / megacore chips."""
    try:
        kind = jax.devices()[0].device_kind.lower()
    except Exception:  # pragma: no cover - defensive
        return 1
    single_tc = any(t in kind for t in ("v5e", "v5 lite", "v5lite",
                                        "v6e", "v6 lite", "v6lite"))
    return 1 if single_tc else 2


def ffnn_kernel(x_ref, w1_ref, b1_ref, w2_ref, b2_ref, o_ref):
    """One batch tile: Linear -> ReLU -> Linear -> LogSoftmax (row-wise)."""
    # Cast activations to the MXU operand dtype *inside* the kernel (free on the
    # VPU here, avoids a separate HBM pass over x in the wrapper).
    x = x_ref[...].astype(w1_ref.dtype)

    # Layer 1 on the MXU; f32 accumulation, bias add + ReLU stay f32.
    h = jnp.dot(x, w1_ref[...], preferred_element_type=jnp.float32)
    h = jnp.maximum(h + b1_ref[...], 0.0)

    # Layer 2: cast back to MXU operand dtype, f32 accumulation + f32 bias.
    # Padded output columns carry a ~-1e30 bias, so after the max-shift their
    # exp() is exactly 0 and the real columns get the exact 5-class LogSoftmax.
    logits = jnp.dot(h.astype(w2_ref.dtype), w2_ref[...],
                     preferred_element_type=jnp.float32) + b2_ref[...]

    # Numerically stable log-softmax along the last dim (full row in this tile).
    m = jnp.max(logits, axis=-1, keepdims=True)
    shifted = logits - m
    lse = jnp.log(jnp.sum(jnp.exp(shifted), axis=-1, keepdims=True))
    o_ref[...] = shifted - lse   # full 128-lane-dense store (no masked vst)


@functools.partial(jax.jit, static_argnames=("block_batch", "mxu_dtype"))
def ffnn_forward(x, w1, b1, w2, b2, *, block_batch=1024, mxu_dtype=jnp.bfloat16):
    """Forward pass of FFNN.  x: (batch, input_dim) f32.  Returns (batch, 5) f32."""
    batch, d_in = x.shape
    hidden = w1.shape[1]
    out_dim = w2.shape[1]

    # ---- Pad hidden and out_dim to full 128-lane widths (exact, see header) ----
    hid_pad = _round_up(max(hidden, _LANE), _LANE)
    out_pad = _round_up(max(out_dim, _LANE), _LANE)

    w1_p = jnp.zeros((d_in, hid_pad), mxu_dtype).at[:, :hidden].set(
        w1.astype(mxu_dtype))
    b1_p = jnp.zeros((1, hid_pad), jnp.float32).at[0, :hidden].set(
        b1.reshape(-1).astype(jnp.float32))
    w2_p = jnp.zeros((hid_pad, out_pad), mxu_dtype).at[:hidden, :out_dim].set(
        w2.astype(mxu_dtype))
    b2_p = jnp.full((1, out_pad), _NEG_BIG, jnp.float32).at[0, :out_dim].set(
        b2.reshape(-1).astype(jnp.float32))

    # ---- Balanced batch tiling; no wrapper-side jnp.pad over x ----
    # grid == (1,) on single-TC chips for small batches; >= 2 tiles on dual-TC.
    n_tiles = max(_min_batch_tiles(), pl.cdiv(batch, block_batch))
    bb = _round_up(pl.cdiv(batch, n_tiles), _SUBLANE)
    grid = (pl.cdiv(batch, bb),)

    w_itemsize = jnp.dtype(mxu_dtype).itemsize
    x_itemsize = jnp.dtype(x.dtype).itemsize
    cost = pl.CostEstimate(
        flops=int(2 * batch * (d_in * hid_pad + hid_pad * out_pad)),
        transcendentals=int(batch * (out_pad + 1)),   # exp per logit + log per row
        bytes_accessed=int(batch * d_in * x_itemsize
                           + d_in * hid_pad * w_itemsize + hid_pad * 4
                           + hid_pad * out_pad * w_itemsize + out_pad * 4
                           + batch * out_pad * 4),
    )

    out = pl.pallas_call(
        ffnn_kernel,
        out_shape=jax.ShapeDtypeStruct((batch, out_pad), jnp.float32),
        grid=grid,
        in_specs=[
            pl.BlockSpec((bb, d_in), lambda i: (i, 0)),          # x: streamed per batch tile
            pl.BlockSpec((d_in, hid_pad), lambda i: (0, 0)),     # W1: VMEM-resident
            pl.BlockSpec((1, hid_pad), lambda i: (0, 0)),        # b1: VMEM-resident
            pl.BlockSpec((hid_pad, out_pad), lambda i: (0, 0)),  # W2: VMEM-resident
            pl.BlockSpec((1, out_pad), lambda i: (0, 0)),        # b2: VMEM-resident
        ],
        out_specs=pl.BlockSpec((bb, out_pad), lambda i: (i, 0)),
        compiler_params=pltpu.CompilerParams(
            dimension_semantics=("parallel",),   # batch tiles are independent
        ),
        cost_estimate=cost,
    )(x, w1_p, b1_p, w2_p, b2_p)

    # Strip the lane padding of the output (padded columns hold ~-1e30).
    return out[:, :out_dim]


def ffnn_reference(x, w1, b1, w2, b2):
    h = jnp.maximum(x @ w1 + b1.reshape(1, -1), 0.0)
    logits = h @ w2 + b2.reshape(1, -1)
    return jax.nn.log_softmax(logits, axis=1)


# TODO(synk): compute_Loss / NLLLoss is a training-time loss, not part of forward().

if __name__ == "__main__":
    # Small shapes consistent with the module's forward: (batch, input_dim) -> 5 classes.
    batch, input_dim, hidden, out_dim = 512, 32, 64, 5

    key = jax.random.PRNGKey(0)
    kx, kw1, kb1, kw2, kb2 = jax.random.split(key, 5)

    x = jax.random.normal(kx, (batch, input_dim), dtype=jnp.float32)

    # Deterministic parameter init (uniform, roughly matching nn.Linear scale).
    bound1 = 1.0 / (input_dim ** 0.5)
    w1 = jax.random.uniform(kw1, (input_dim, hidden), jnp.float32, -bound1, bound1)
    b1 = jax.random.uniform(kb1, (hidden,), jnp.float32, -bound1, bound1)

    bound2 = 1.0 / (hidden ** 0.5)
    w2 = jax.random.uniform(kw2, (hidden, out_dim), jnp.float32, -bound2, bound2)
    b2 = jax.random.uniform(kb2, (out_dim,), jnp.float32, -bound2, bound2)

    ref = ffnn_reference(x, w1, b1, w2, b2)

    # f32 MXU-operand path: tight correctness check vs. JAX reference.
    out_f32 = jax.block_until_ready(
        ffnn_forward(x, w1, b1, w2, b2, mxu_dtype=jnp.float32))
    assert out_f32.shape == (batch, out_dim)
    assert jnp.allclose(out_f32, ref, atol=1e-3, rtol=1e-3), "f32 path mismatch"

    # Default fast path: bf16 MXU operands, f32 accumulation (looser tolerance).
    out_bf16 = jax.block_until_ready(ffnn_forward(x, w1, b1, w2, b2))
    assert out_bf16.shape == (batch, out_dim)
    assert jnp.allclose(out_bf16, ref, atol=5e-2, rtol=5e-2), "bf16 path mismatch"

    # Ragged batch (not a multiple of 8 / the tile) exercises boundary-block masking.
    out_ragged = jax.block_until_ready(
        ffnn_forward(x[:37], w1, b1, w2, b2, mxu_dtype=jnp.float32))
    assert out_ragged.shape == (37, out_dim)
    assert jnp.allclose(out_ragged, ref[:37], atol=1e-3, rtol=1e-3), "ragged mismatch"
    assert jnp.all(jnp.isfinite(out_ragged)), "ragged rows not finite"

    print("KERNEL_OK")
</pallas_src>

<mosaic_0001>
module attributes {stable_mosaic.version = 11 : i64} {
  func.func @ffnn_kernel(%arg0: i32, %arg1: memref<256x32xf32, #tpu.memory_space<vmem>>, %arg2: memref<32x128xf32, #tpu.memory_space<vmem>>, %arg3: memref<1x128xf32, #tpu.memory_space<vmem>>, %arg4: memref<128x128xf32, #tpu.memory_space<vmem>>, %arg5: memref<1x128xf32, #tpu.memory_space<vmem>>, %arg6: memref<256x128xf32, #tpu.memory_space<vmem>>) attributes {dimension_semantics = [#tpu.dimension_semantics<parallel>], iteration_bounds = array<i64: 2>, scalar_prefetch = 0 : i64, scratch_operands = 0 : i64, tpu.core_type = #tpu.core_type<tc>, window_params = [{transform_indices = @transform_0, window_bounds = array<i64: 256, 32>}, {pipeline_mode = #tpu.pipeline_mode<synchronous>, transform_indices = @transform_1, window_bounds = array<i64: 32, 128>}, {pipeline_mode = #tpu.pipeline_mode<synchronous>, transform_indices = @transform_2, window_bounds = array<i64: 1, 128>}, {pipeline_mode = #tpu.pipeline_mode<synchronous>, transform_indices = @transform_3, window_bounds = array<i64: 128, 128>}, {pipeline_mode = #tpu.pipeline_mode<synchronous>, transform_indices = @transform_4, window_bounds = array<i64: 1, 128>}, {transform_indices = @transform_5, window_bounds = array<i64: 256, 128>}]} {
    %c0 = arith.constant 0 : index
    %c0_0 = arith.constant 0 : index
    %0 = vector.load %arg1[%c0, %c0_0] : memref<256x32xf32, #tpu.memory_space<vmem>>, vector<256x32xf32>
    %c0_1 = arith.constant 0 : index
    %c0_2 = arith.constant 0 : index
    %1 = vector.load %arg2[%c0_1, %c0_2] : memref<32x128xf32, #tpu.memory_space<vmem>>, vector<32x128xf32>
    %cst = arith.constant dense<0.000000e+00> : vector<256x128xf32>
    %2 = tpu.matmul %0, %1, %cst {dimension_numbers = #tpu.dot_dimension_numbers<[1], [0], [0], [1], [0, 0, 1, 1], [], []>} : vector<256x32xf32>, vector<32x128xf32>, vector<256x128xf32> -> vector<256x128xf32>
    %c0_3 = arith.constant 0 : index
    %c0_4 = arith.constant 0 : index
    %3 = vector.load %arg3[%c0_3, %c0_4] : memref<1x128xf32, #tpu.memory_space<vmem>>, vector<1x128xf32>
    %4 = vector.broadcast %3 : vector<1x128xf32> to vector<256x128xf32>
    %5 = arith.addf %2, %4 : vector<256x128xf32>
    %cst_5 = arith.constant 0.000000e+00 : f32
    %6 = vector.broadcast %cst_5 : f32 to vector<256x128xf32>
    %7 = arith.maximumf %5, %6 : vector<256x128xf32>
    %c0_6 = arith.constant 0 : index
    %c0_7 = arith.constant 0 : index
    %8 = vector.load %arg4[%c0_6, %c0_7] : memref<128x128xf32, #tpu.memory_space<vmem>>, vector<128x128xf32>
    %cst_8 = arith.constant dense<0.000000e+00> : vector<256x128xf32>
    %9 = tpu.matmul %7, %8, %cst_8 {dimension_numbers = #tpu.dot_dimension_numbers<[1], [0], [0], [1], [0, 0, 1, 1], [], []>} : vector<256x128xf32>, vector<128x128xf32>, vector<256x128xf32> -> vector<256x128xf32>
    %c0_9 = arith.constant 0 : index
    %c0_10 = arith.constant 0 : index
    %10 = vector.load %arg5[%c0_9, %c0_10] : memref<1x128xf32, #tpu.memory_space<vmem>>, vector<1x128xf32>
    %11 = vector.broadcast %10 : vector<1x128xf32> to vector<256x128xf32>
    %12 = arith.addf %9, %11 : vector<256x128xf32>
    %cst_11 = arith.constant dense<0xFF800000> : vector<256xf32>
    %13 = vector.multi_reduction <maximumf>, %12, %cst_11 [1] : vector<256x128xf32> to vector<256xf32>
    %14 = vector.shape_cast %13 : vector<256xf32> to vector<256x1xf32>
    %15 = vector.broadcast %14 : vector<256x1xf32> to vector<256x128xf32>
    %16 = arith.subf %12, %15 : vector<256x128xf32>
    %17 = math.exp %16 : vector<256x128xf32>
    %cst_12 = arith.constant dense<0.000000e+00> : vector<256xf32>
    %18 = vector.multi_reduction <add>, %17, %cst_12 [1] : vector<256x128xf32> to vector<256xf32>
    %19 = vector.shape_cast %18 : vector<256xf32> to vector<256x1xf32>
    %20 = math.log %19 : vector<256x1xf32>
    %21 = vector.broadcast %20 : vector<256x1xf32> to vector<256x128xf32>
    %22 = arith.subf %16, %21 : vector<256x128xf32>
    %c0_13 = arith.constant 0 : index
    %c0_14 = arith.constant 0 : index
    %23 = vector.load %arg6[%c0_13, %c0_14] : memref<256x128xf32, #tpu.memory_space<vmem>>, vector<256x128xf32>
    tpu.vector_store %arg6[%c0_13, %c0_14], %22 {strides = array<i32>} : memref<256x128xf32, #tpu.memory_space<vmem>>, vector<256x128xf32>,
    return
  }
  func.func @transform_0(%arg0: i32) -> (i32, i32) {
    %c0_i32 = arith.constant 0 : i32
    %c0_i32_0 = arith.constant 0 : i32
    return %arg0, %c0_i32 : i32, i32
  }
  func.func @transform_1(%arg0: i32) -> (i32, i32) {
    %c0_i32 = arith.constant 0 : i32
    %c0_i32_0 = arith.constant 0 : i32
    %c0_i32_1 = arith.constant 0 : i32
    return %c0_i32, %c0_i32_0 : i32, i32
  }
  func.func @transform_2(%arg0: i32) -> (i32, i32) {
    %c0_i32 = arith.constant 0 : i32
    %c0_i32_0 = arith.constant 0 : i32
    %c0_i32_1 = arith.constant 0 : i32
    return %c0_i32, %c0_i32_0 : i32, i32
  }
  func.func @transform_3(%arg0: i32) -> (i32, i32) {
    %c0_i32 = arith.constant 0 : i32
    %c0_i32_0 = arith.constant 0 : i32
    %c0_i32_1 = arith.constant 0 : i32
    return %c0_i32, %c0_i32_0 : i32, i32
  }
  func.func @transform_4(%arg0: i32) -> (i32, i32) {
    %c0_i32 = arith.constant 0 : i32
    %c0_i32_0 = arith.constant 0 : i32
    %c0_i32_1 = arith.constant 0 : i32
    return %c0_i32, %c0_i32_0 : i32, i32
  }
  func.func @transform_5(%arg0: i32) -> (i32, i32) {
    %c0_i32 = arith.constant 0 : i32
    %c0_i32_0 = arith.constant 0 : i32
    return %arg0, %c0_i32 : i32, i32
  }
}

</mosaic_0001>

<bundles_post_ra>
// kernel: ffnn_forward.1
= control target key start
LH: loop header
LB: loop body
LE: loop exit
PB: predicated region body
PF: predicated region fallthrough
CT: control target
= control target key end

     0   :  { %s1776_s18 = smov 0   ;;  %s2290_s0 = inlined_call_operand.vmem [shape: f32[512,32], index: 0, kind: input, shape index: {}]   ;;  %s2291_s1 = inlined_call_operand.vmem [shape: f32[32,128], index: 1, kind: input, shape index: {}]   ;;  %s2292_s2 = inlined_call_operand.vmem [shape: f32[1,128], index: 2, kind: input, shape index: {}]   ;;  %s2293_s3 = inlined_call_operand.vmem [shape: f32[128,128], index: 3, kind: input, shape index: {}]   ;;  %s2294_s4 = inlined_call_operand.vmem [shape: f32[1,128], index: 4, kind: input, shape index: {}]   ;;  %s2295_s5 = inlined_call_operand.vmem [shape: f32[512,128], index: 5, kind: output, shape index: {}]  }
   0x1 LB: > { %s1281_s19 = sadd.s32 4294967295, %s1744_s18   ;;  %p1285_p0 = scmp.ge.s32.totalorder %s1744_s18, 1  ;;  %s1744_s18 = sphi %s1776_s18, %s15_s18  }
   0x2   : > { %p188_p1 = scmp.lt.s32.totalorder %s1744_s18, 3 }
   0x4   : > { %p189_p2 = pnand %p1285_p0, %p188_p1 }
   0x5   : > { %v260_v0 = vld [vmem:[%s2291_s1] sm:$0xff] (!%p189_p2)  ;;  %v261_v1 = vld [vmem:[%s2291_s1 + $0x8] sm:$0xff] (!%p189_p2)  ;;  %v262_v2 = vld [vmem:[%s2291_s1 + $0x10] sm:$0xff] (!%p189_p2)  ;;  %s1286_s26 = sshll.u32 (!%p189_p2), %s1281_s19, 5  ;;  %vm271_vm0 = vcmask (!%p189_p2), 261120  }
   0x6   : > { %192 = sbr.rel (%p189_p2) target bundleno = 830 (0x33e), region = 40  ;;  %v1546_v3 = vpack.c.bf16 (!%p189_p2), %v261_v1, %v260_v0  ;;  %v263_v4 = vld [vmem:[%s2291_s1 + $0x18] sm:$0xff] (!%p189_p2)  ;;  %p217_p3 = scmp.lt.s32.totalorder (!%p189_p2), %s1286_s26, 63  ;;  %v625_v5 = vld [vmem:[%s2293_s3] sm:$0xff] (!%p189_p2)  ;;  %v626_v6 = vld [vmem:[%s2293_s3 + $0x8] sm:$0xff] (!%p189_p2) }
   0x7   : > { %v1550_v7 = vpack.c.bf16 (!%p189_p2), %v263_v4, %v262_v2  ;;  %v1554_v8 = vpack.c.bf16 (!%p189_p2), %v626_v6, %v625_v5  ;;  %v627_v9 = vld [vmem:[%s2293_s3 + $0x10] sm:$0xff] (!%p189_p2)  ;;  %v628_v10 = vld [vmem:[%s2293_s3 + $0x18] sm:$0xff] (!%p189_p2)  ;;  %v629_v12 = vld [vmem:[%s2293_s3 + $0x20] sm:$0xff] (!%p189_p2) }
   0x8   : > { %1547 = vmatprep.subr.bf16.mxu0 (!%p189_p2), %v1546_v3  ;;  %v1558_v11 = vpack.c.bf16 (!%p189_p2), %v628_v10, %v627_v9  ;;  %v630_v13 = vld [vmem:[%s2293_s3 + $0x28] sm:$0xff] (!%p189_p2)  ;;  %v631_v18 = vld [vmem:[%s2293_s3 + $0x30] sm:$0xff] (!%p189_p2)  ;;  %v632_v19 = vld [vmem:[%s2293_s3 + $0x38] sm:$0xff] (!%p189_p2) }
   0x9   : > { %1549 = vmatpush3.bf16.msra.mxu0 (!%p189_p2), %v1546_v3  ;;  %1586 = vmatprep.subr.bf16.mxu1 (!%p189_p2), %v1554_v8  ;;  %v1562_v16 = vpack.c.bf16 (!%p189_p2), %v630_v13, %v629_v12  ;;  %v1566_v21 = vpack.c.bf16 (!%p189_p2), %v632_v19, %v631_v18  ;;  %v633_v23 = vld [vmem:[%s2293_s3 + $0x40] sm:$0xff] (!%p189_p2)  ;;  %v634_v24 = vld [vmem:[%s2293_s3 + $0x48] sm:$0xff] (!%p189_p2)  ;;  %v635_v28 = vld [vmem:[%s2293_s3 + $0x50] sm:$0xff] (!%p189_p2) }
   0xa   : > { %1551 = vmatprep.subr.bf16.mxu0 (!%p189_p2), %v1550_v7  ;;  %1594 = vmatpush3.bf16.msra.mxu1 (!%p189_p2), %v1554_v8  ;;  %v1570_v26 = vpack.c.bf16 (!%p189_p2), %v634_v24, %v633_v23  ;;  %v636_v29 = vld [vmem:[%s2293_s3 + $0x58] sm:$0xff] (!%p189_p2)  ;;  %v637_v33 = vld [vmem:[%s2293_s3 + $0x60] sm:$0xff] (!%p189_p2)  ;;  %v638_v34 = vld [vmem:[%s2293_s3 + $0x68] sm:$0xff] (!%p189_p2) }
   0xb   : > { %1587 = vmatprep.subr.bf16.mxu1 (!%p189_p2), %v1558_v11  ;;  %v1574_v31 = vpack.c.bf16 (!%p189_p2), %v636_v29, %v635_v28  ;;  %v1578_v36 = vpack.c.bf16 (!%p189_p2), %v638_v34, %v637_v33  ;;  %v639_v38 = vld [vmem:[%s2293_s3 + $0x70] sm:$0xff] (!%p189_p2)  ;;  %v640_v39 = vld [vmem:[%s2293_s3 + $0x78] sm:$0xff] (!%p189_p2)  ;;  %v1921_v62 = vld [vmem:[%s2292_s2] ss:$0 sm:$0xff] (!%p189_p2) }
   0xc   : > { %v1582_v41 = vpack.c.bf16 (!%p189_p2), %v640_v39, %v639_v38 }
   0xd   : > { %s2297_s26 = smov (!%p217_p3, %s1286_s26), 63  ;;  %1553 = vmatpush3.bf16.msra.mxu0 %v1550_v7 }
   0xe   : > { %s1287_s12 = sshll.u32 %s2297_s26, 3  ;;  %1555 = vmatprep.subr.bf16.mxu0 %v1554_v8  ;;  %1595 = vmatpush3.bf16.msra.mxu1 %v1558_v11 }
   0xf   : > { %s1822_s20 = scalar_lea.vmem %s2290_s0, %s1287_s12  ;;  %1588 = vmatprep.subr.bf16.mxu1 %v1562_v16  ;;  %s2221_s25 = scalar_lea.vmem %s2295_s5, %s1287_s12 }
  0x10   : > { %v228_v14 = vld [vmem:[%s1822_s20] sm:$0xff]  ;;  %v229_v15 = vld [vmem:[%s1822_s20 + $0x8] sm:$0xff]  ;;  %v230_v17 = vld [vmem:[%s1822_s20 + $0x10] sm:$0xff] }
  0x11   : > { %1418 = vmatprep.mubr.msk.f32.mxu0 %vm271_vm0, %v228_v14  ;;  %v231_v20 = vld [vmem:[%s1822_s20 + $0x18] sm:$0xff]  ;;  %v232_v22 = vld [vmem:[%s1822_s20 + $0x20] sm:$0xff]  ;;  %v233_v25 = vld [vmem:[%s1822_s20 + $0x28] sm:$0xff] }
  0x12   : > { %1419 = vmatmul.mubr.msk.f32.vlgmr.msra.gmra.mrb[0].mxu0 %vm271_vm0, %v229_v15  ;;  %1596 = vmatpush3.bf16.msra.mxu1 %v1562_v16  ;;  %v234_v27 = vld [vmem:[%s1822_s20 + $0x30] sm:$0xff]  ;;  %v235_v30 = vld [vmem:[%s1822_s20 + $0x38] sm:$0xff]  ;;  %v236_v32 = vld [vmem:[%s1822_s20 + $0x40] sm:$0xff] }
  0x13   : > { %1421 = vmatprep.mubr.msk.f32.mxu0 %vm271_vm0, %v230_v17  ;;  %1557 = vmatpush3.bf16.msra.mxu0 %v1554_v8  ;;  %v237_v35 = vld [vmem:[%s1822_s20 + $0x48] sm:$0xff]  ;;  %v238_v37 = vld [vmem:[%s1822_s20 + $0x50] sm:$0xff]  ;;  %v239_v40 = vld [vmem:[%s1822_s20 + $0x58] sm:$0xff] }
  0x14   : > { %1559 = vmatprep.subr.bf16.mxu0 %v1558_v11  ;;  %1589 = vmatprep.subr.bf16.mxu1 %v1566_v21  ;;  %v240_v42 = vld [vmem:[%s1822_s20 + $0x60] sm:$0xff]  ;;  %v241_v43 = vld [vmem:[%s1822_s20 + $0x68] sm:$0xff]  ;;  %v242_v44 = vld [vmem:[%s1822_s20 + $0x70] sm:$0xff] }
  0x15   : > { %v243_v45 = vld [vmem:[%s1822_s20 + $0x78] sm:$0xff]  ;;  %v244_v46 = vld [vmem:[%s1822_s20 + $0x80] sm:$0xff]  ;;  %v245_v47 = vld [vmem:[%s1822_s20 + $0x88] sm:$0xff] }
  0x16   : > { %1422 = vmatmul.mubr.msk.f32.gmra.mrb[2].mxu0 %vm271_vm0, %v231_v20  ;;  %1597 = vmatpush3.bf16.msra.mxu1 %v1566_v21  ;;  %v246_v48 = vld [vmem:[%s1822_s20 + $0x90] sm:$0xff]  ;;  %v247_v49 = vld [vmem:[%s1822_s20 + $0x98] sm:$0xff]  ;;  %v248_v50 = vld [vmem:[%s1822_s20 + $0xa0] sm:$0xff] }
  0x17   : > { %1424 = vmatprep.mubr.msk.f32.mxu0 %vm271_vm0, %v232_v22  ;;  %1561 = vmatpush3.bf16.msra.mxu0 %v1558_v11  ;;  %v249_v51 = vld [vmem:[%s1822_s20 + $0xa8] sm:$0xff]  ;;  %v250_v52 = vld [vmem:[%s1822_s20 + $0xb0] sm:$0xff]  ;;  %v251_v53 = vld [vmem:[%s1822_s20 + $0xb8] sm:$0xff] }
  0x18   : > { %1563 = vmatprep.subr.bf16.mxu0 %v1562_v16  ;;  %1590 = vmatprep.subr.bf16.mxu1 %v1570_v26  ;;  %v252_v54 = vld [vmem:[%s1822_s20 + $0xc0] sm:$0xff]  ;;  %v253_v55 = vld [vmem:[%s1822_s20 + $0xc8] sm:$0xff]  ;;  %v254_v56 = vld [vmem:[%s1822_s20 + $0xd0] sm:$0xff] }
  0x19   : > { %v255_v57 = vld [vmem:[%s1822_s20 + $0xd8] sm:$0xff]  ;;  %v256_v58 = vld [vmem:[%s1822_s20 + $0xe0] sm:$0xff]  ;;  %v257_v59 = vld [vmem:[%s1822_s20 + $0xe8] sm:$0xff] }
  0x1a   : > { %1425 = vmatmul.mubr.msk.f32.gmra.mrb[4].mxu0 %vm271_vm0, %v233_v25  ;;  %1598 = vmatpush3.bf16.msra.mxu1 %v1570_v26  ;;  %v258_v60 = vld [vmem:[%s1822_s20 + $0xf0] sm:$0xff]  ;;  %v259_v61 = vld [vmem:[%s1822_s20 + $0xf8] sm:$0xff] }
  0x1b   : > { %1427 = vmatprep.mubr.msk.f32.mxu0 %vm271_vm0, %v234_v27  ;;  %1565 = vmatpush3.bf16.msra.mxu0 %v1562_v16 }
  0x1c   : > { %1567 = vmatprep.subr.bf16.mxu0 %v1566_v21  ;;  %1591 = vmatprep.subr.bf16.mxu1 %v1574_v31 }
  0x1e   : > { %1428 = vmatmul.mubr.msk.f32.gmra.mrb[6].mxu0 %vm271_vm0, %v235_v30  ;;  %1599 = vmatpush3.bf16.msra.mxu1 %v1574_v31 }
  0x1f   : > { %1430 = vmatprep.mubr.msk.f32.mxu0 %vm271_vm0, %v236_v32  ;;  %1569 = vmatpush3.bf16.msra.mxu0 %v1566_v21 }
  0x20   : > { %1571 = vmatprep.subr.bf16.mxu0 %v1570_v26  ;;  %1592 = vmatprep.subr.bf16.mxu1 %v1578_v36 }
  0x22   : > { %1431 = vmatmul.mubr.msk.f32.gmra.mrb[8].mxu0 %vm271_vm0, %v237_v35  ;;  %1600 = vmatpush3.bf16.msra.mxu1 %v1578_v36 }
  0x23   : > { %1433 = vmatprep.mubr.msk.f32.mxu0 %vm271_vm0, %v238_v37  ;;  %1573 = vmatpush3.bf16.msra.mxu0 %v1570_v26 }
  0x24   : > { %1575 = vmatprep.subr.bf16.mxu0 %v1574_v31  ;;  %1593 = vmatprep.subr.bf16.mxu1 %v1582_v41 }
  0x26   : > { %1434 = vmatmul.mubr.msk.f32.gmra.mrb[10].mxu0 %vm271_vm0, %v239_v40  ;;  %1601 = vmatpush3.bf16.msra.mxu1 %v1582_v41 }
  0x27   : > { %1436 = vmatprep.mubr.msk.f32.mxu0 %vm271_vm0, %v240_v42  ;;  %1577 = vmatpush3.bf16.msra.mxu0 %v1574_v31 }
  0x28   : > { %1579 = vmatprep.subr.bf16.mxu0 %v1578_v36 }
  0x2a   : > { %1437 = vmatmul.mubr.msk.f32.gmra.mrb[12].mxu0 %vm271_vm0, %v241_v43 }
  0x2b   : > { %1439 = vmatprep.mubr.msk.f32.mxu0 %vm271_vm0, %v242_v44  ;;  %1581 = vmatpush3.bf16.msra.mxu0 %v1578_v36 }
  0x2c   : > { %1583 = vmatprep.subr.bf16.mxu0 %v1582_v41 }
  0x2e   : > { %1440 = vmatmul.mubr.msk.f32.gmra.mrb[14].mxu0 %vm271_vm0, %v243_v45 }
  0x2f   : > { %1442 = vmatprep.mubr.msk.f32.mxu0 %vm271_vm0, %v244_v46  ;;  %1585 = vmatpush3.bf16.msra.mxu0 %v1582_v41 }
  0x32   : > { %1443 = vmatmul.mubr.msk.f32.gmra.mrb[16].mxu0 %vm271_vm0, %v245_v47 }
  0x33   : > { %1445 = vmatprep.mubr.msk.f32.mxu0 %vm271_vm0, %v246_v48 }
  0x36   : > { %1446 = vmatmul.mubr.msk.f32.gmra.mrb[18].mxu0 %vm271_vm0, %v247_v49 }
  0x37   : > { %1448 = vmatprep.mubr.msk.f32.mxu0 %vm271_vm0, %v248_v50 }
  0x3a   : > { %1449 = vmatmul.mubr.msk.f32.gmra.mrb[20].mxu0 %vm271_vm0, %v249_v51 }
  0x3b   : > { %1451 = vmatprep.mubr.msk.f32.mxu0 %vm271_vm0, %v250_v52 }
  0x3e   : > { %1452 = vmatmul.mubr.msk.f32.gmra.mrb[22].mxu0 %vm271_vm0, %v251_v53 }
  0x3f   : > { %1454 = vmatprep.mubr.msk.f32.mxu0 %vm271_vm0, %v252_v54 }
  0x42   : > { %1455 = vmatmul.mubr.msk.f32.gmra.mrb[24].mxu0 %vm271_vm0, %v253_v55 }
  0x43   : > { %1457 = vmatprep.mubr.msk.f32.mxu0 %vm271_vm0, %v254_v56 }
  0x46   : > { %1458 = vmatmul.mubr.msk.f32.gmra.mrb[26].mxu0 %vm271_vm0, %v255_v57 }
  0x47   : > { %1460 = vmatprep.mubr.msk.f32.mxu0 %vm271_vm0, %v256_v58 }
  0x4a   : > { %1461 = vmatmul.mubr.msk.f32.gmra.mrb[28].mxu0 %vm271_vm0, %v257_v59 }
  0x4b   : > { %1463 = vmatprep.mubr.msk.f32.mxu0 %vm271_vm0, %v258_v60 }
  0x4e   : > { %1464 = vmatmul.mubr.msk.f32.gmra.mrb[30].mxu0 %vm271_vm0, %v259_v61 }
  0xe5   : > { %v1420_v63 = vpop.f32.mrb[0].mxu0 }
  0xe6   : > { %v440_v0 = vadd.f32 %v1420_v63, %v1921_v62  ;;  %v434_v1 = vpop.f32.mrb[1].mxu0 }
  0xe7   : > { %v435_v2 = vadd.f32 %v1921_v62, %v434_v1 }
  0xe8   : > { %v594_v5 = vmax.f32 %v440_v0, 0.0 }
  0xe9   : > { %v593_v3 = vmax.f32 %v435_v2, 0.0  ;;  %v1423_v4 = vpop.f32.mrb[2].mxu0 }
  0xea   : > { %v450_v6 = vadd.f32 %v1423_v4, %v1921_v62  ;;  %v444_v7 = vpop.f32.mrb[3].mxu0 }
  0xeb   : > { %v445_v8 = vadd.f32 %v1921_v62, %v444_v7  ;;  %1498 = vmatprep.mubr.f32.mxu0 %v593_v3 }
  0xec   : > { %1499 = vmatmul.mubr.f32.vlgmr.msra.gmra.mrb[32].mxu0 %v594_v5  ;;  %v596_v11 = vmax.f32 %v450_v6, 0.0 }
  0xed   : > { %v595_v9 = vmax.f32 %v445_v8, 0.0  ;;  %v1426_v10 = vpop.f32.mrb[4].mxu0 }
  0xee   : > { %v460_v12 = vadd.f32 %v1426_v10, %v1921_v62  ;;  %v454_v13 = vpop.f32.mrb[5].mxu0 }
  0xef   : > { %v455_v14 = vadd.f32 %v1921_v62, %v454_v13  ;;  %1501 = vmatprep.mubr.f32.mxu0 %v595_v9 }
  0xf0   : > { %v598_v15 = vmax.f32 %v460_v12, 0.0  ;;  %1502 = vmatmul.mubr.f32.gmra.mrb[34].mxu0 %v596_v11 }
  0xf1   : > { %v597_v16 = vmax.f32 %v455_v14, 0.0  ;;  %v1429_v17 = vpop.f32.mrb[6].mxu0 }
  0xf2   : > { %v470_v18 = vadd.f32 %v1429_v17, %v1921_v62  ;;  %v464_v19 = vpop.f32.mrb[7].mxu0 }
  0xf3   : > { %1504 = vmatprep.mubr.f32.mxu0 %v597_v16  ;;  %v465_v20 = vadd.f32 %v1921_v62, %v464_v19 }
  0xf4   : > { %v600_v21 = vmax.f32 %v470_v18, 0.0  ;;  %1505 = vmatmul.mubr.f32.gmra.mrb[36].mxu0 %v598_v15 }
  0xf5   : > { %v1432_v22 = vpop.f32.mrb[8].mxu0  ;;  %v599_v23 = vmax.f32 %v465_v20, 0.0 }
  0xf6   : > { %v480_v24 = vadd.f32 %v1432_v22, %v1921_v62  ;;  %v474_v25 = vpop.f32.mrb[9].mxu0 }
  0xf7   : > { %v475_v26 = vadd.f32 %v1921_v62, %v474_v25  ;;  %1507 = vmatprep.mubr.f32.mxu1 %v599_v23 }
  0xf8   : > { %v602_v27 = vmax.f32 %v480_v24, 0.0  ;;  %1508 = vmatmul.mubr.f32.vlgmr.msra.gmra.mrb[0].mxu1 %v600_v21 }
  0xf9   : > { %v601_v28 = vmax.f32 %v475_v26, 0.0  ;;  %v1435_v29 = vpop.f32.mrb[10].mxu0 }
  0xfa   : > { %v490_v30 = vadd.f32 %v1435_v29, %v1921_v62  ;;  %v484_v31 = vpop.f32.mrb[11].mxu0 }
  0xfb   : > { %v485_v32 = vadd.f32 %v1921_v62, %v484_v31  ;;  %1510 = vmatprep.mubr.f32.mxu1 %v601_v28 }
  0xfc   : > { %v604_v33 = vmax.f32 %v490_v30, 0.0  ;;  %1511 = vmatmul.mubr.f32.gmra.mrb[2].mxu1 %v602_v27 }
  0xfd   : > { %v603_v34 = vmax.f32 %v485_v32, 0.0  ;;  %v1438_v35 = vpop.f32.mrb[12].mxu0  ;;  %v1958_v32 = vld [vmem:[%s2294_s4] ss:$0 sm:$0xff] }
  0xfe   : > { %v500_v36 = vadd.f32 %v1438_v35, %v1921_v62  ;;  %v494_v37 = vpop.f32.mrb[13].mxu0 }
  0xff   : > { %v495_v38 = vadd.f32 %v1921_v62, %v494_v37  ;;  %1513 = vmatprep.mubr.f32.mxu1 %v603_v34 }
 0x100   : > { %v606_v39 = vmax.f32 %v500_v36, 0.0  ;;  %1514 = vmatmul.mubr.f32.gmra.mrb[4].mxu1 %v604_v33 }
 0x101   : > { %v605_v40 = vmax.f32 %v495_v38, 0.0  ;;  %v1441_v41 = vpop.f32.mrb[14].mxu0 }
 0x102   : > { %v510_v42 = vadd.f32 %v1441_v41, %v1921_v62  ;;  %v504_v43 = vpop.f32.mrb[15].mxu0 }
 0x103   : > { %v505_v44 = vadd.f32 %v1921_v62, %v504_v43  ;;  %1516 = vmatprep.mubr.f32.mxu1 %v605_v40 }
 0x104   : > { %v608_v45 = vmax.f32 %v510_v42, 0.0  ;;  %1517 = vmatmul.mubr.f32.gmra.mrb[6].mxu1 %v606_v39 }
 0x105   : > { %v607_v46 = vmax.f32 %v505_v44, 0.0  ;;  %v1444_v47 = vpop.f32.mrb[16].mxu0 }
 0x106   : > { %v520_v48 = vadd.f32 %v1444_v47, %v1921_v62  ;;  %v514_v49 = vpop.f32.mrb[17].mxu0 }
 0x107   : > { %v515_v50 = vadd.f32 %v1921_v62, %v514_v49  ;;  %1519 = vmatprep.mubr.f32.mxu1 %v607_v46 }
 0x108   : > { %v610_v51 = vmax.f32 %v520_v48, 0.0  ;;  %1520 = vmatmul.mubr.f32.gmra.mrb[8].mxu1 %v608_v45 }
 0x109   : > { %v609_v52 = vmax.f32 %v515_v50, 0.0  ;;  %v1447_v53 = vpop.f32.mrb[18].mxu0 }
 0x10a   : > { %v530_v54 = vadd.f32 %v1447_v53, %v1921_v62  ;;  %v524_v55 = vpop.f32.mrb[19].mxu0 }
 0x10b   : > { %v525_v56 = vadd.f32 %v1921_v62, %v524_v55  ;;  %1522 = vmatprep.mubr.f32.mxu1 %v609_v52 }
 0x10c   : > { %v612_v57 = vmax.f32 %v530_v54, 0.0  ;;  %1523 = vmatmul.mubr.f32.gmra.mrb[10].mxu1 %v610_v51 }
 0x10d   : > { %v611_v58 = vmax.f32 %v525_v56, 0.0  ;;  %v1450_v59 = vpop.f32.mrb[20].mxu0 }
 0x10e   : > { %v540_v60 = vadd.f32 %v1450_v59, %v1921_v62  ;;  %v534_v61 = vpop.f32.mrb[21].mxu0 }
 0x10f   : > { %v535_v63 = vadd.f32 %v1921_v62, %v534_v61  ;;  %1525 = vmatprep.mubr.f32.mxu1 %v611_v58 }
 0x110   : > { %v614_v0 = vmax.f32 %v540_v60, 0.0  ;;  %1526 = vmatmul.mubr.f32.gmra.mrb[12].mxu1 %v612_v57 }
 0x111   : > { %v613_v1 = vmax.f32 %v535_v63, 0.0  ;;  %v1453_v2 = vpop.f32.mrb[22].mxu0 }
 0x112   : > { %v550_v3 = vadd.f32 %v1453_v2, %v1921_v62  ;;  %v544_v4 = vpop.f32.mrb[23].mxu0 }
 0x113   : > { %v545_v5 = vadd.f32 %v1921_v62, %v544_v4  ;;  %1528 = vmatprep.mubr.f32.mxu1 %v613_v1 }
 0x114   : > { %v616_v6 = vmax.f32 %v550_v3, 0.0  ;;  %1529 = vmatmul.mubr.f32.gmra.mrb[14].mxu1 %v614_v0 }
 0x115   : > { %v615_v7 = vmax.f32 %v545_v5, 0.0  ;;  %v1456_v8 = vpop.f32.mrb[24].mxu0 }
 0x116   : > { %v560_v9 = vadd.f32 %v1456_v8, %v1921_v62  ;;  %v554_v10 = vpop.f32.mrb[25].mxu0 }
 0x117   : > { %v555_v11 = vadd.f32 %v1921_v62, %v554_v10  ;;  %1531 = vmatprep.mubr.f32.mxu1 %v615_v7 }
 0x118   : > { %v618_v12 = vmax.f32 %v560_v9, 0.0  ;;  %1532 = vmatmul.mubr.f32.gmra.mrb[16].mxu1 %v616_v6 }
 0x119   : > { %v617_v13 = vmax.f32 %v555_v11, 0.0  ;;  %v1459_v14 = vpop.f32.mrb[26].mxu0 }
 0x11a   : > { %v570_v15 = vadd.f32 %v1459_v14, %v1921_v62  ;;  %v564_v16 = vpop.f32.mrb[27].mxu0 }
 0x11b   : > { %v565_v17 = vadd.f32 %v1921_v62, %v564_v16  ;;  %1534 = vmatprep.mubr.f32.mxu1 %v617_v13 }
 0x11c   : > { %v620_v18 = vmax.f32 %v570_v15, 0.0  ;;  %1535 = vmatmul.mubr.f32.gmra.mrb[18].mxu1 %v618_v12 }
 0x11d   : > { %v619_v19 = vmax.f32 %v565_v17, 0.0  ;;  %v1462_v20 = vpop.f32.mrb[28].mxu0 }
 0x11e   : > { %v580_v21 = vadd.f32 %v1462_v20, %v1921_v62  ;;  %v574_v22 = vpop.f32.mrb[29].mxu0 }
 0x11f   : > { %v575_v23 = vadd.f32 %v1921_v62, %v574_v22  ;;  %1537 = vmatprep.mubr.f32.mxu1 %v619_v19 }
 0x120   : > { %v622_v24 = vmax.f32 %v580_v21, 0.0  ;;  %1538 = vmatmul.mubr.f32.gmra.mrb[20].mxu1 %v620_v18 }
 0x121   : > { %v621_v25 = vmax.f32 %v575_v23, 0.0  ;;  %v1465_v26 = vpop.f32.mrb[30].mxu0 }
 0x122   : > { %v590_v27 = vadd.f32 %v1465_v26, %v1921_v62  ;;  %v584_v28 = vpop.f32.mrb[31].mxu0 }
 0x123   : > { %v585_v29 = vadd.f32 %v1921_v62, %v584_v28  ;;  %1540 = vmatprep.mubr.f32.mxu1 %v621_v25 }
 0x124   : > { %v624_v30 = vmax.f32 %v590_v27, 0.0  ;;  %1541 = vmatmul.mubr.f32.gmra.mrb[22].mxu1 %v622_v24 }
 0x125   : > { %v623_v31 = vmax.f32 %v585_v29, 0.0 }
 0x127   : > { %1543 = vmatprep.mubr.f32.mxu1 %v623_v31 }
 0x128   : > { %1544 = vmatmul.mubr.f32.gmra.mrb[24].mxu1 %v624_v30 }
 0x1bf   : > { %v1500_v33 = vpop.f32.mrb[32].mxu0 }
 0x1c0   : > { %v1961_v34 = vadd.f32 %v1500_v33, %v1958_v32  ;;  %v714_v35 = vpop.f32.mrb[33].mxu0 }
 0x1c1   : > { %v1965_v62 = vadd.f32 %v1958_v32, %v714_v35 }
 0x1c2   : > { %875 = vmax.xlane.f32.xlu0 %v1961_v34 }
 0x1c3   : > { %v1503_v36 = vpop.f32.mrb[34].mxu0 }
 0x1c4   : > { %v1968_v37 = vadd.f32 %v1503_v36, %v1958_v32  ;;  %v724_v38 = vpop.f32.mrb[35].mxu0 }
 0x1c5   : > { %v1973_v40 = vadd.f32 %v1958_v32, %v724_v38 }
 0x1c6   : > { %879 = vmax.xlane.f32.xlu1 %v1968_v37  ;;  %873 = vmax.xlane.f32.xlu0 %v1965_v62 }
 0x1c7   : > { %v1506_v39 = vpop.f32.mrb[36].mxu0 }
 0x1c8   : > { %v734_v41 = vpop.f32.mrb[37].mxu0  ;;  %v1981_v44 = vadd.f32 %v1506_v39, %v1958_v32 }
 0x1c9   : > { %v1976_v42 = vadd.f32 %v1958_v32, %v734_v41 }
 0x1ca   : > { %877 = vmax.xlane.f32.xlu1 %v1973_v40 }
 0x1cb   : > { %v1509_v43 = vpop.f32.mrb[0].mxu1  ;;  %881 = vmax.xlane.f32.xlu0 %v1976_v42 }
 0x1cc   : > { %v744_v45 = vpop.f32.mrb[1].mxu1  ;;  %v1989_v48 = vadd.f32 %v1509_v43, %v1958_v32 }
 0x1cd   : > { %v1984_v46 = vadd.f32 %v1958_v32, %v744_v45 }
 0x1ce   : > { %883 = vmax.xlane.f32.xlu1 %v1981_v44 }
 0x1cf   : > { %v1512_v47 = vpop.f32.mrb[2].mxu1  ;;  %885 = vmax.xlane.f32.xlu0 %v1984_v46 }
 0x1d0   : > { %v754_v49 = vpop.f32.mrb[3].mxu1  ;;  %v1997_v52 = vadd.f32 %v1512_v47, %v1958_v32 }
 0x1d1   : > { %v1992_v50 = vadd.f32 %v1958_v32, %v754_v49 }
 0x1d2   : > { %887 = vmax.xlane.f32.xlu1 %v1989_v48 }
 0x1d3   : > { %v1515_v51 = vpop.f32.mrb[4].mxu1  ;;  %889 = vmax.xlane.f32.xlu0 %v1992_v50 }
 0x1d4   : > { %v764_v53 = vpop.f32.mrb[5].mxu1  ;;  %v2005_v56 = vadd.f32 %v1515_v51, %v1958_v32 }
 0x1d5   : > { %v2000_v54 = vadd.f32 %v1958_v32, %v764_v53 }
 0x1d6   : > { %891 = vmax.xlane.f32.xlu1 %v1997_v52 }
 0x1d7   : > { %v1518_v55 = vpop.f32.mrb[6].mxu1  ;;  %893 = vmax.xlane.f32.xlu0 %v2000_v54 }
 0x1d8   : > { %v774_v57 = vpop.f32.mrb[7].mxu1  ;;  %v2013_v60 = vadd.f32 %v1518_v55, %v1958_v32 }
 0x1d9   : > { %v2008_v58 = vadd.f32 %v1958_v32, %v774_v57 }
 0x1da   : > { %895 = vmax.xlane.f32.xlu1 %v2005_v56 }
 0x1db   : > { %v1521_v59 = vpop.f32.mrb[8].mxu1  ;;  %897 = vmax.xlane.f32.xlu0 %v2008_v58 }
 0x1dc   : > { %v784_v61 = vpop.f32.mrb[9].mxu1  ;;  %v2021_v1 = vadd.f32 %v1521_v59, %v1958_v32 }
 0x1dd   : > { %v2016_v63 = vadd.f32 %v1958_v32, %v784_v61 }
 0x1de   : > { %899 = vmax.xlane.f32.xlu1 %v2013_v60 }
 0x1df   : > { %v1524_v0 = vpop.f32.mrb[10].mxu1  ;;  %901 = vmax.xlane.f32.xlu0 %v2016_v63 }
 0x1e0   : > { %v794_v2 = vpop.f32.mrb[11].mxu1  ;;  %v2029_v5 = vadd.f32 %v1524_v0, %v1958_v32 }
 0x1e1   : > { %v2024_v3 = vadd.f32 %v1958_v32, %v794_v2 }
 0x1e2   : > { %903 = vmax.xlane.f32.xlu1 %v2021_v1 }
 0x1e3   : > { %v1527_v4 = vpop.f32.mrb[12].mxu1  ;;  %905 = vmax.xlane.f32.xlu0 %v2024_v3 }
 0x1e4   : > { %v804_v6 = vpop.f32.mrb[13].mxu1  ;;  %v2037_v9 = vadd.f32 %v1527_v4, %v1958_v32 }
 0x1e5   : > { %v2032_v7 = vadd.f32 %v1958_v32, %v804_v6 }
 0x1e6   : > { %907 = vmax.xlane.f32.xlu1 %v2029_v5 }
 0x1e7   : > { %v1530_v8 = vpop.f32.mrb[14].mxu1  ;;  %909 = vmax.xlane.f32.xlu0 %v2032_v7 }
 0x1e8   : > { %v814_v10 = vpop.f32.mrb[15].mxu1  ;;  %v2045_v13 = vadd.f32 %v1530_v8, %v1958_v32 }
 0x1e9   : > { %v2040_v11 = vadd.f32 %v1958_v32, %v814_v10 }
 0x1ea   : > { %911 = vmax.xlane.f32.xlu1 %v2037_v9 }
 0x1eb   : > { %v1533_v12 = vpop.f32.mrb[16].mxu1  ;;  %913 = vmax.xlane.f32.xlu0 %v2040_v11 }
 0x1ec   : > { %v824_v14 = vpop.f32.mrb[17].mxu1  ;;  %v2053_v17 = vadd.f32 %v1533_v12, %v1958_v32 }
 0x1ed   : > { %v2048_v15 = vadd.f32 %v1958_v32, %v824_v14 }
 0x1ee   : > { %915 = vmax.xlane.f32.xlu1 %v2045_v13 }
 0x1ef   : > { %v1536_v16 = vpop.f32.mrb[18].mxu1  ;;  %917 = vmax.xlane.f32.xlu0 %v2048_v15 }
 0x1f0   : > { %v834_v18 = vpop.f32.mrb[19].mxu1  ;;  %v2061_v21 = vadd.f32 %v1536_v16, %v1958_v32 }
 0x1f1   : > { %v2056_v19 = vadd.f32 %v1958_v32, %v834_v18 }
 0x1f2   : > { %919 = vmax.xlane.f32.xlu1 %v2053_v17 }
 0x1f3   : > { %v1539_v20 = vpop.f32.mrb[20].mxu1  ;;  %921 = vmax.xlane.f32.xlu0 %v2056_v19 }
 0x1f4   : > { %v844_v22 = vpop.f32.mrb[21].mxu1  ;;  %v2069_v25 = vadd.f32 %v1539_v20, %v1958_v32 }
 0x1f5   : > { %v2064_v23 = vadd.f32 %v1958_v32, %v844_v22 }
 0x1f6   : > { %923 = vmax.xlane.f32.xlu1 %v2061_v21 }
 0x1f7   : > { %v1542_v24 = vpop.f32.mrb[22].mxu1  ;;  %925 = vmax.xlane.f32.xlu0 %v2064_v23 }
 0x1f8   : > { %v854_v26 = vpop.f32.mrb[23].mxu1  ;;  %v2077_v29 = vadd.f32 %v1542_v24, %v1958_v32 }
 0x1f9   : > { %v2072_v27 = vadd.f32 %v1958_v32, %v854_v26 }
 0x1fa   : > { %927 = vmax.xlane.f32.xlu1 %v2069_v25 }
 0x1fb   : > { %v1545_v28 = vpop.f32.mrb[24].mxu1  ;;  %929 = vmax.xlane.f32.xlu0 %v2072_v27 }
 0x1fc   : > { %v2080_v30 = vadd.f32 %v1545_v28, %v1958_v32  ;;  %v864_v31 = vpop.f32.mrb[25].mxu1 }
 0x1fd   : > { %v2083_v33 = vadd.f32 %v1958_v32, %v864_v31 }
 0x1fe   : > { %931 = vmax.xlane.f32.xlu1 %v2077_v29 }
 0x1ff   : > { %933 = vmax.xlane.f32.xlu0 %v2083_v33 }
 0x202   : > { %935 = vmax.xlane.f32.xlu1 %v2080_v30 }
 0x24f   : > { %v876_v35 = vpop.xlane.xlu0 %875 }
 0x250   : > { %v2089_v36 = vsub.f32 %v1961_v34, %v876_v35 }
 0x252   : > { %v971_v38 = vmul.f32 1.442695, %v2089_v36 }
 0x253   : > { %v880_v39 = vpop.xlane.xlu1 %879  ;;  %v874_v41 = vpop.xlane.xlu0 %873 }
 0x254   : > { %1610 = vpow2.f32 %v971_v38  ;;  %v2093_v43 = vsub.f32 %v1968_v37, %v880_v39  ;;  %v2096_v32 = vsub.f32 %v1965_v62, %v874_v41 }
 0x256   : > { %v975_v45 = vmul.f32 1.442695, %v2093_v43  ;;  %v969_v47 = vmul.f32 1.442695, %v2096_v32 }
 0x257   : > { %v878_v49 = vpop.xlane.xlu1 %877 }
 0x258   : > { %1612 = vpow2.f32 %v975_v45  ;;  %v2101_v34 = vsub.f32 %v1973_v40, %v878_v49  ;;  %v882_v51 = vpop.xlane.xlu0 %881 }
 0x259   : > { %1614 = vpow2.f32 %v969_v47  ;;  %v2104_v53 = vsub.f32 %v1976_v42, %v882_v51 }
 0x25a   : > { %v973_v37 = vmul.f32 1.442695, %v2101_v34 }
 0x25b   : > { %v884_v55 = vpop.xlane.xlu1 %883  ;;  %v977_v59 = vmul.f32 1.442695, %v2104_v53 }
 0x25c   : > { %1616 = vpow2.f32 %v973_v37  ;;  %v2108_v62 = vsub.f32 %v1981_v44, %v884_v55  ;;  %v886_v57 = vpop.xlane.xlu0 %885 }
 0x25d   : > { %v2112_v61 = vsub.f32 %v1984_v46, %v886_v57 }
 0x25e   : > { %v1611_v40 = vpop.eup %1610  ;;  %v979_v0 = vmul.f32 1.442695, %v2108_v62 }
 0x25f   : > { %1035 = vadd.xlane.f32.xlu1 %v1611_v40  ;;  %v888_v2 = vpop.xlane.xlu1 %887  ;;  %v981_v44 = vmul.f32 1.442695, %v2112_v61 }
 0x260   : > { %1618 = vpow2.f32 %v979_v0  ;;  %v2116_v42 = vsub.f32 %v1989_v48, %v888_v2  ;;  %v890_v4 = vpop.xlane.xlu0 %889 }
 0x261   : > { %1620 = vpow2.f32 %v977_v59  ;;  %v2120_v6 = vsub.f32 %v1992_v50, %v890_v4 }
 0x262   : > { %v1613_v8 = vpop.eup %1612  ;;  %v983_v46 = vmul.f32 1.442695, %v2116_v42 }
 0x263   : > { %v1615_v10 = vpop.eup %1614  ;;  %1039 = vadd.xlane.f32.xlu1 %v1613_v8  ;;  %v892_v12 = vpop.xlane.xlu1 %891  ;;  %v985_v16 = vmul.f32 1.442695, %v2120_v6 }
 0x264   : > { %1622 = vpow2.f32 %v983_v46  ;;  %v2124_v14 = vsub.f32 %v1997_v52, %v892_v12  ;;  %1033 = vadd.xlane.f32.xlu0 %v1615_v10  ;;  %v894_v48 = vpop.xlane.xlu0 %893 }
 0x265   : > { %1624 = vpow2.f32 %v981_v44  ;;  %v2128_v18 = vsub.f32 %v2000_v54, %v894_v48 }
 0x266   : > { %v1617_v50 = vpop.eup %1616  ;;  %v987_v20 = vmul.f32 1.442695, %v2124_v14 }
 0x267   : > { %v896_v22 = vpop.xlane.xlu1 %895  ;;  %v989_v52 = vmul.f32 1.442695, %v2128_v18 }
 0x268   : > { %1626 = vpow2.f32 %v987_v20  ;;  %v2132_v24 = vsub.f32 %v2005_v56, %v896_v22  ;;  %1037 = vadd.xlane.f32.xlu0 %v1617_v50  ;;  %v898_v26 = vpop.xlane.xlu0 %897 }
 0x269   : > { %1628 = vpow2.f32 %v985_v16  ;;  %v2136_v28 = vsub.f32 %v2008_v58, %v898_v26 }
 0x26a   : > { %v1619_v31 = vpop.eup %1618  ;;  %v991_v54 = vmul.f32 1.442695, %v2132_v24 }
 0x26b   : > { %v1621_v35 = vpop.eup %1620  ;;  %1043 = vadd.xlane.f32.xlu1 %v1619_v31  ;;  %v900_v38 = vpop.xlane.xlu1 %899  ;;  %v993_v41 = vmul.f32 1.442695, %v2136_v28 }
 0x26c   : > { %1630 = vpow2.f32 %v991_v54  ;;  %v2140_v39 = vsub.f32 %v2013_v60, %v900_v38  ;;  %1041 = vadd.xlane.f32.xlu0 %v1621_v35  ;;  %v902_v56 = vpop.xlane.xlu0 %901 }
 0x26d   : > { %1632 = vpow2.f32 %v989_v52  ;;  %v2144_v45 = vsub.f32 %v2016_v63, %v902_v56 }
 0x26e   : > { %v1623_v58 = vpop.eup %1622  ;;  %v995_v47 = vmul.f32 1.442695, %v2140_v39 }
 0x26f   : > { %v1625_v49 = vpop.eup %1624  ;;  %1047 = vadd.xlane.f32.xlu1 %v1623_v58  ;;  %v904_v51 = vpop.xlane.xlu1 %903  ;;  %v997_v55 = vmul.f32 1.442695, %v2144_v45 }
 0x270   : > { %1634 = vpow2.f32 %v995_v47  ;;  %v2148_v37 = vsub.f32 %v2021_v1, %v904_v51  ;;  %1045 = vadd.xlane.f32.xlu0 %v1625_v49  ;;  %v906_v60 = vpop.xlane.xlu0 %905 }
 0x271   : > { %1636 = vpow2.f32 %v993_v41  ;;  %v2152_v57 = vsub.f32 %v2024_v3, %v906_v60 }
 0x272   : > { %v1627_v63 = vpop.eup %1626  ;;  %v999_v59 = vmul.f32 1.442695, %v2148_v37 }
 0x273   : > { %v1629_v40 = vpop.eup %1628  ;;  %1051 = vadd.xlane.f32.xlu1 %v1627_v63  ;;  %v908_v0 = vpop.xlane.xlu1 %907  ;;  %v1001_v4 = vmul.f32 1.442695, %v2152_v57 }
 0x274   : > { %1638 = vpow2.f32 %v999_v59  ;;  %v2156_v2 = vsub.f32 %v2029_v5, %v908_v0  ;;  %1049 = vadd.xlane.f32.xlu0 %v1629_v40  ;;  %v910_v1 = vpop.xlane.xlu0 %909 }
 0x275   : > { %1640 = vpow2.f32 %v997_v55  ;;  %v2160_v44 = vsub.f32 %v2032_v7, %v910_v1 }
 0x276   : > { %v1631_v3 = vpop.eup %1630  ;;  %v1003_v8 = vmul.f32 1.442695, %v2156_v2 }
 0x277   : > { %v1633_v46 = vpop.eup %1632  ;;  %1055 = vadd.xlane.f32.xlu1 %v1631_v3  ;;  %v912_v10 = vpop.xlane.xlu1 %911  ;;  %v1005_v48 = vmul.f32 1.442695, %v2160_v44 }
 0x278   : > { %1642 = vpow2.f32 %v1003_v8  ;;  %v2164_v12 = vsub.f32 %v2037_v9, %v912_v10  ;;  %1053 = vadd.xlane.f32.xlu0 %v1633_v46  ;;  %v914_v5 = vpop.xlane.xlu0 %913 }
 0x279   : > { %1644 = vpow2.f32 %v1001_v4  ;;  %v2168_v16 = vsub.f32 %v2040_v11, %v914_v5 }
 0x27a   : > { %v1635_v7 = vpop.eup %1634  ;;  %v1007_v50 = vmul.f32 1.442695, %v2164_v12 }
 0x27b   : > { %v1637_v20 = vpop.eup %1636  ;;  %1059 = vadd.xlane.f32.xlu1 %v1635_v7  ;;  %v916_v22 = vpop.xlane.xlu1 %915  ;;  %v1009_v52 = vmul.f32 1.442695, %v2168_v16 }
 0x27c   : > { %1646 = vpow2.f32 %v1007_v50  ;;  %v2172_v26 = vsub.f32 %v2045_v13, %v916_v22  ;;  %1057 = vadd.xlane.f32.xlu0 %v1637_v20  ;;  %v918_v9 = vpop.xlane.xlu0 %917 }
 0x27d   : > { %1648 = vpow2.f32 %v1005_v48  ;;  %v2176_v31 = vsub.f32 %v2048_v15, %v918_v9 }
 0x27e   : > { %v1639_v11 = vpop.eup %1638  ;;  %v1011_v54 = vmul.f32 1.442695, %v2172_v26 }
 0x27f   : > { %v1641_v35 = vpop.eup %1640  ;;  %1063 = vadd.xlane.f32.xlu1 %v1639_v11  ;;  %v920_v38 = vpop.xlane.xlu1 %919  ;;  %v1013_v41 = vmul.f32 1.442695, %v2176_v31 }
 0x280   : > { %1650 = vpow2.f32 %v1011_v54  ;;  %v2180_v56 = vsub.f32 %v2053_v17, %v920_v38  ;;  %1061 = vadd.xlane.f32.xlu0 %v1641_v35  ;;  %v922_v13 = vpop.xlane.xlu0 %921 }
 0x281   : > { %1652 = vpow2.f32 %v1009_v52  ;;  %v2184_v58 = vsub.f32 %v2056_v19, %v922_v13 }
 0x282   : > { %v1643_v15 = vpop.eup %1642  ;;  %v1015_v47 = vmul.f32 1.442695, %v2180_v56 }
 0x283   : > { %v1645_v49 = vpop.eup %1644  ;;  %1067 = vadd.xlane.f32.xlu1 %v1643_v15  ;;  %v924_v51 = vpop.xlane.xlu1 %923  ;;  %v1017_v55 = vmul.f32 1.442695, %v2184_v58 }
 0x284   : > { %1654 = vpow2.f32 %v1015_v47  ;;  %v2188_v60 = vsub.f32 %v2061_v21, %v924_v51  ;;  %1065 = vadd.xlane.f32.xlu0 %v1645_v49  ;;  %v926_v17 = vpop.xlane.xlu0 %925 }
 0x285   : > { %1656 = vpow2.f32 %v1013_v41  ;;  %v2192_v63 = vsub.f32 %v2064_v23, %v926_v17 }
 0x286   : > { %v1647_v19 = vpop.eup %1646  ;;  %v1019_v59 = vmul.f32 1.442695, %v2188_v60 }
 0x287   : > { %v1649_v40 = vpop.eup %1648  ;;  %1071 = vadd.xlane.f32.xlu1 %v1647_v19  ;;  %v928_v0 = vpop.xlane.xlu1 %927  ;;  %v1021_v4 = vmul.f32 1.442695, %v2192_v63 }
 0x288   : > { %1658 = vpow2.f32 %v1019_v59  ;;  %v2196_v1 = vsub.f32 %v2069_v25, %v928_v0  ;;  %1069 = vadd.xlane.f32.xlu0 %v1649_v40  ;;  %v930_v21 = vpop.xlane.xlu0 %929 }
 0x289   : > { %1660 = vpow2.f32 %v1017_v55  ;;  %v2200_v3 = vsub.f32 %v2072_v27, %v930_v21 }
 0x28a   : > { %v1651_v23 = vpop.eup %1650  ;;  %v1023_v8 = vmul.f32 1.442695, %v2196_v1 }
 0x28b   : > { %v1653_v46 = vpop.eup %1652  ;;  %1075 = vadd.xlane.f32.xlu1 %v1651_v23  ;;  %v932_v10 = vpop.xlane.xlu1 %931  ;;  %v1025_v48 = vmul.f32 1.442695, %v2200_v3 }
 0x28c   : > { %1662 = vpow2.f32 %v1023_v8  ;;  %v2204_v5 = vsub.f32 %v2077_v29, %v932_v10  ;;  %1073 = vadd.xlane.f32.xlu0 %v1653_v46  ;;  %v934_v25 = vpop.xlane.xlu0 %933 }
 0x28d   : > { %1664 = vpow2.f32 %v1021_v4  ;;  %v2208_v7 = vsub.f32 %v2083_v33, %v934_v25 }
 0x28e   : > { %v1655_v27 = vpop.eup %1654  ;;  %v1027_v50 = vmul.f32 1.442695, %v2204_v5 }
 0x28f   : > { %v1657_v20 = vpop.eup %1656  ;;  %1079 = vadd.xlane.f32.xlu1 %v1655_v27  ;;  %v936_v22 = vpop.xlane.xlu1 %935  ;;  %v1029_v29 = vmul.f32 1.442695, %v2208_v7 }
 0x290   : > { %1666 = vpow2.f32 %v1027_v50  ;;  %v2212_v9 = vsub.f32 %v2080_v30, %v936_v22  ;;  %1077 = vadd.xlane.f32.xlu0 %v1657_v20 }
 0x291   : > { %1668 = vpow2.f32 %v1025_v48 }
 0x292   : > { %v1659_v52 = vpop.eup %1658  ;;  %v1031_v11 = vmul.f32 1.442695, %v2212_v9 }
 0x293   : > { %v1661_v54 = vpop.eup %1660  ;;  %1083 = vadd.xlane.f32.xlu1 %v1659_v52 }
 0x294   : > { %1670 = vpow2.f32 %v1031_v11  ;;  %1081 = vadd.xlane.f32.xlu0 %v1661_v54 }
 0x295   : > { %1672 = vpow2.f32 %v1029_v29 }
 0x296   : > { %v1663_v33 = vpop.eup %1662 }
 0x297   : > { %v1665_v35 = vpop.eup %1664  ;;  %1087 = vadd.xlane.f32.xlu1 %v1663_v33 }
 0x298   : > { %1085 = vadd.xlane.f32.xlu0 %v1665_v35 }
 0x29a   : > { %v1667_v38 = vpop.eup %1666 }
 0x29b   : > { %v1669_v13 = vpop.eup %1668  ;;  %1091 = vadd.xlane.f32.xlu1 %v1667_v38 }
 0x29c   : > { %1089 = vadd.xlane.f32.xlu0 %v1669_v13 }
 0x29e   : > { %v1671_v30 = vpop.eup %1670 }
 0x29f   : > { %v1673_v41 = vpop.eup %1672  ;;  %1095 = vadd.xlane.f32.xlu1 %v1671_v30 }
 0x2a0   : > { %1093 = vadd.xlane.f32.xlu0 %v1673_v41 }
 0x2ec   : > { %v1036_v15 = vpop.xlane.xlu1 %1035 }
 0x2ed   : > { %1674 = vlog2.f32 %v1036_v15 }
 0x2f0   : > { %v1040_v47 = vpop.xlane.xlu1 %1039 }
 0x2f1   : > { %1676 = vlog2.f32 %v1040_v47  ;;  %v1034_v49 = vpop.xlane.xlu0 %1033 }
 0x2f2   : > { %1678 = vlog2.f32 %v1034_v49 }
 0x2f5   : > { %v1038_v51 = vpop.xlane.xlu0 %1037 }
 0x2f6   : > { %1680 = vlog2.f32 %v1038_v51 }
 0x2f7   : > { %v1675_v17 = vpop.eup %1674 }
 0x2f8   : > { %v1100_v55 = vmul.f32 0.6931472, %v1675_v17  ;;  %v1044_v19 = vpop.xlane.xlu1 %1043 }
 0x2f9   : > { %1682 = vlog2.f32 %v1044_v19  ;;  %v1042_v59 = vpop.xlane.xlu0 %1041 }
 0x2fa   : > { %v1162_v40 = vsub.f32 %v2089_v36, %v1100_v55  ;;  %1684 = vlog2.f32 %v1042_v59 }
 0x2fb   : > { %v1677_v0 = vpop.eup %1676 }
 0x2fc   : > { %v1679_v21 = vpop.eup %1678  ;;  %1194 = vst [vmem:[%s2221_s25 + $0x8] sm:$0xff] %v1162_v40  ;;  %v1104_v4 = vmul.f32 0.6931472, %v1677_v0  ;;  %v1048_v23 = vpop.xlane.xlu1 %1047 }
 0x2fd   : > { %v1098_v8 = vmul.f32 0.6931472, %v1679_v21  ;;  %1686 = vlog2.f32 %v1048_v23  ;;  %v1046_v46 = vpop.xlane.xlu0 %1045 }
 0x2fe   : > { %v1164_v10 = vsub.f32 %v2093_v43, %v1104_v4  ;;  %1688 = vlog2.f32 %v1046_v46 }
 0x2ff   : > { %v1161_v25 = vsub.f32 %v2096_v32, %v1098_v8 }
 0x300   : > { %v1681_v48 = vpop.eup %1680  ;;  %1196 = vst [vmem:[%s2221_s25 + $0x18] sm:$0xff] %v1164_v10  ;;  %v1052_v27 = vpop.xlane.xlu1 %1051 }
 0x301   : > { %1193 = vst [vmem:[%s2221_s25] sm:$0xff] %v1161_v25  ;;  %v1102_v36 = vmul.f32 0.6931472, %v1681_v48  ;;  %1690 = vlog2.f32 %v1052_v27  ;;  %v1050_v50 = vpop.xlane.xlu0 %1049 }
 0x302   : > { %1692 = vlog2.f32 %v1050_v50 }
 0x303   : > { %v1683_v20 = vpop.eup %1682  ;;  %v1163_v22 = vsub.f32 %v2101_v34, %v1102_v36 }
 0x304   : > { %v1685_v29 = vpop.eup %1684  ;;  %v1108_v52 = vmul.f32 0.6931472, %v1683_v20  ;;  %v1056_v43 = vpop.xlane.xlu1 %1055 }
 0x305   : > { %1195 = vst [vmem:[%s2221_s25 + $0x10] sm:$0xff] %v1163_v22  ;;  %v1106_v11 = vmul.f32 0.6931472, %v1685_v29  ;;  %1694 = vlog2.f32 %v1056_v43  ;;  %v1054_v32 = vpop.xlane.xlu0 %1053 }
 0x306   : > { %v1166_v54 = vsub.f32 %v2108_v62, %v1108_v52  ;;  %1696 = vlog2.f32 %v1054_v32 }
 0x307   : > { %v1687_v33 = vpop.eup %1686  ;;  %v1165_v35 = vsub.f32 %v2104_v53, %v1106_v11 }
 0x308   : > { %v1689_v38 = vpop.eup %1688  ;;  %1198 = vst [vmem:[%s2221_s25 + $0x28] sm:$0xff] %v1166_v54  ;;  %v1112_v13 = vmul.f32 0.6931472, %v1687_v33  ;;  %v1060_v34 = vpop.xlane.xlu1 %1059 }
 0x309   : > { %1197 = vst [vmem:[%s2221_s25 + $0x20] sm:$0xff] %v1165_v35  ;;  %v1110_v30 = vmul.f32 0.6931472, %v1689_v38  ;;  %1698 = vlog2.f32 %v1060_v34  ;;  %v1058_v41 = vpop.xlane.xlu0 %1057 }
 0x30a   : > { %v1168_v15 = vsub.f32 %v2116_v42, %v1112_v13  ;;  %1700 = vlog2.f32 %v1058_v41 }
 0x30b   : > { %v1691_v47 = vpop.eup %1690  ;;  %v1167_v62 = vsub.f32 %v2112_v61, %v1110_v30 }
 0x30c   : > { %v1693_v49 = vpop.eup %1692  ;;  %1200 = vst [vmem:[%s2221_s25 + $0x38] sm:$0xff] %v1168_v15  ;;  %v1116_v53 = vmul.f32 0.6931472, %v1691_v47  ;;  %v1064_v51 = vpop.xlane.xlu1 %1063 }
 0x30d   : > { %1199 = vst [vmem:[%s2221_s25 + $0x30] sm:$0xff] %v1167_v62  ;;  %v1114_v17 = vmul.f32 0.6931472, %v1693_v49  ;;  %1702 = vlog2.f32 %v1064_v51  ;;  %v1062_v55 = vpop.xlane.xlu0 %1061 }
 0x30e   : > { %v1170_v19 = vsub.f32 %v2124_v14, %v1116_v53  ;;  %1704 = vlog2.f32 %v1062_v55 }
 0x30f   : > { %v1695_v59 = vpop.eup %1694  ;;  %v1169_v42 = vsub.f32 %v2120_v6, %v1114_v17 }
 0x310   : > { %v1697_v40 = vpop.eup %1696  ;;  %1202 = vst [vmem:[%s2221_s25 + $0x48] sm:$0xff] %v1170_v19  ;;  %v1120_v61 = vmul.f32 0.6931472, %v1695_v59  ;;  %v1068_v0 = vpop.xlane.xlu1 %1067 }
 0x311   : > { %1201 = vst [vmem:[%s2221_s25 + $0x40] sm:$0xff] %v1169_v42  ;;  %v1118_v21 = vmul.f32 0.6931472, %v1697_v40  ;;  %1706 = vlog2.f32 %v1068_v0  ;;  %v1066_v4 = vpop.xlane.xlu0 %1065 }
 0x312   : > { %v1172_v23 = vsub.f32 %v2132_v24, %v1120_v61  ;;  %1708 = vlog2.f32 %v1066_v4 }
 0x313   : > { %v1699_v8 = vpop.eup %1698  ;;  %v1171_v14 = vsub.f32 %v2128_v18, %v1118_v21 }
 0x314   : > { %v1701_v46 = vpop.eup %1700  ;;  %1204 = vst [vmem:[%s2221_s25 + $0x58] sm:$0xff] %v1172_v23  ;;  %v1124_v6 = vmul.f32 0.6931472, %v1699_v8  ;;  %v1072_v10 = vpop.xlane.xlu1 %1071 }
 0x315   : > { %1203 = vst [vmem:[%s2221_s25 + $0x50] sm:$0xff] %v1171_v14  ;;  %v1122_v25 = vmul.f32 0.6931472, %v1701_v46  ;;  %1710 = vlog2.f32 %v1072_v10  ;;  %v1070_v48 = vpop.xlane.xlu0 %1069 }
 0x316   : > { %v1174_v27 = vsub.f32 %v2140_v39, %v1124_v6  ;;  %1712 = vlog2.f32 %v1070_v48 }
 0x317   : > { %v1703_v36 = vpop.eup %1702  ;;  %v1173_v24 = vsub.f32 %v2136_v28, %v1122_v25 }
 0x318   : > { %v1705_v50 = vpop.eup %1704  ;;  %1206 = vst [vmem:[%s2221_s25 + $0x68] sm:$0xff] %v1174_v27  ;;  %v1128_v18 = vmul.f32 0.6931472, %v1703_v36  ;;  %v1076_v20 = vpop.xlane.xlu1 %1075 }
 0x319   : > { %1205 = vst [vmem:[%s2221_s25 + $0x60] sm:$0xff] %v1173_v24  ;;  %v1126_v22 = vmul.f32 0.6931472, %v1705_v50  ;;  %1714 = vlog2.f32 %v1076_v20  ;;  %v1074_v29 = vpop.xlane.xlu0 %1073 }
 0x31a   : > { %v1176_v52 = vsub.f32 %v2148_v37, %v1128_v18  ;;  %1716 = vlog2.f32 %v1074_v29 }
 0x31b   : > { %v1707_v43 = vpop.eup %1706  ;;  %v1175_v39 = vsub.f32 %v2144_v45, %v1126_v22 }
 0x31c   : > { %v1709_v11 = vpop.eup %1708  ;;  %1208 = vst [vmem:[%s2221_s25 + $0x78] sm:$0xff] %v1176_v52  ;;  %v1132_v28 = vmul.f32 0.6931472, %v1707_v43  ;;  %v1080_v32 = vpop.xlane.xlu1 %1079 }
 0x31d   : > { %1207 = vst [vmem:[%s2221_s25 + $0x70] sm:$0xff] %v1175_v39  ;;  %v1130_v54 = vmul.f32 0.6931472, %v1709_v11  ;;  %1718 = vlog2.f32 %v1080_v32  ;;  %v1078_v33 = vpop.xlane.xlu0 %1077 }
 0x31e   : > { %v1178_v35 = vsub.f32 %v2156_v2, %v1132_v28  ;;  %1720 = vlog2.f32 %v1078_v33 }
 0x31f   : > { %v1711_v38 = vpop.eup %1710  ;;  %v1177_v37 = vsub.f32 %v2152_v57, %v1130_v54 }
 0x320   : > { %v1713_v13 = vpop.eup %1712  ;;  %1210 = vst [vmem:[%s2221_s25 + $0x88] sm:$0xff] %v1178_v35  ;;  %v1136_v45 = vmul.f32 0.6931472, %v1711_v38  ;;  %v1084_v34 = vpop.xlane.xlu1 %1083 }
 0x321   : > { %1209 = vst [vmem:[%s2221_s25 + $0x80] sm:$0xff] %v1177_v37  ;;  %v1134_v30 = vmul.f32 0.6931472, %v1713_v13  ;;  %1722 = vlog2.f32 %v1084_v34  ;;  %v1082_v41 = vpop.xlane.xlu0 %1081 }
 0x322   : > { %v1180_v15 = vsub.f32 %v2164_v12, %v1136_v45  ;;  %1724 = vlog2.f32 %v1082_v41 }
 0x323   : > { %v1715_v47 = vpop.eup %1714  ;;  %v1179_v2 = vsub.f32 %v2160_v44, %v1134_v30 }
 0x324   : > { %v1717_v62 = vpop.eup %1716  ;;  %1212 = vst [vmem:[%s2221_s25 + $0x98] sm:$0xff] %v1180_v15  ;;  %v1140_v57 = vmul.f32 0.6931472, %v1715_v47  ;;  %v1088_v49 = vpop.xlane.xlu1 %1087 }
 0x325   : > { %1211 = vst [vmem:[%s2221_s25 + $0x90] sm:$0xff] %v1179_v2  ;;  %v1138_v53 = vmul.f32 0.6931472, %v1717_v62  ;;  %1726 = vlog2.f32 %v1088_v49  ;;  %v1086_v51 = vpop.xlane.xlu0 %1085 }
 0x326   : > { %v1182_v17 = vsub.f32 %v2172_v26, %v1140_v57  ;;  %1728 = vlog2.f32 %v1086_v51 }
 0x327   : > { %v1719_v55 = vpop.eup %1718  ;;  %v1181_v12 = vsub.f32 %v2168_v16, %v1138_v53 }
 0x328   : > { %v1721_v19 = vpop.eup %1720  ;;  %1214 = vst [vmem:[%s2221_s25 + $0xa8] sm:$0xff] %v1182_v17  ;;  %v1144_v44 = vmul.f32 0.6931472, %v1719_v55  ;;  %v1092_v59 = vpop.xlane.xlu1 %1091 }
 0x329   : > { %1213 = vst [vmem:[%s2221_s25 + $0xa0] sm:$0xff] %v1181_v12  ;;  %v1142_v42 = vmul.f32 0.6931472, %v1721_v19  ;;  %1730 = vlog2.f32 %v1092_v59  ;;  %v1090_v40 = vpop.xlane.xlu0 %1089 }
 0x32a   : > { %v1184_v61 = vsub.f32 %v2180_v56, %v1144_v44  ;;  %1732 = vlog2.f32 %v1090_v40 }
 0x32b   : > { %v1723_v0 = vpop.eup %1722  ;;  %v1183_v26 = vsub.f32 %v2176_v31, %v1142_v42 }
 0x32c   : > { %v1725_v21 = vpop.eup %1724  ;;  %1216 = vst [vmem:[%s2221_s25 + $0xb8] sm:$0xff] %v1184_v61  ;;  %v1148_v16 = vmul.f32 0.6931472, %v1723_v0  ;;  %v1096_v4 = vpop.xlane.xlu1 %1095 }
 0x32d   : > { %1215 = vst [vmem:[%s2221_s25 + $0xb0] sm:$0xff] %v1183_v26  ;;  %v1146_v23 = vmul.f32 0.6931472, %v1725_v21  ;;  %1734 = vlog2.f32 %v1096_v4  ;;  %v1094_v8 = vpop.xlane.xlu0 %1093 }
 0x32e   : > { %v1186_v14 = vsub.f32 %v2188_v60, %v1148_v16  ;;  %1736 = vlog2.f32 %v1094_v8 }
 0x32f   : > { %v1727_v56 = vpop.eup %1726  ;;  %v1185_v46 = vsub.f32 %v2184_v58, %v1146_v23 }
 0x330   : > { %v1729_v6 = vpop.eup %1728  ;;  %1218 = vst [vmem:[%s2221_s25 + $0xc8] sm:$0xff] %v1186_v14  ;;  %v1152_v31 = vmul.f32 0.6931472, %v1727_v56 }
 0x331   : > { %1217 = vst [vmem:[%s2221_s25 + $0xc0] sm:$0xff] %v1185_v46  ;;  %v1150_v10 = vmul.f32 0.6931472, %v1729_v6 }
 0x332   : > { %v1188_v25 = vsub.f32 %v2196_v1, %v1152_v31 }
 0x333   : > { %v1731_v48 = vpop.eup %1730  ;;  %v1187_v27 = vsub.f32 %v2192_v63, %v1150_v10 }
 0x334   : > { %v1733_v36 = vpop.eup %1732  ;;  %1220 = vst [vmem:[%s2221_s25 + $0xd8] sm:$0xff] %v1188_v25  ;;  %v1156_v60 = vmul.f32 0.6931472, %v1731_v48 }
 0x335   : > { %1219 = vst [vmem:[%s2221_s25 + $0xd0] sm:$0xff] %v1187_v27  ;;  %v1154_v24 = vmul.f32 0.6931472, %v1733_v36 }
 0x336   : > { %v1190_v58 = vsub.f32 %v2204_v5, %v1156_v60 }
 0x337   : > { %v1735_v50 = vpop.eup %1734  ;;  %v1189_v18 = vsub.f32 %v2200_v3, %v1154_v24 }
 0x338   : > { %v1737_v20 = vpop.eup %1736  ;;  %1222 = vst [vmem:[%s2221_s25 + $0xe8] sm:$0xff] %v1190_v58  ;;  %v1160_v22 = vmul.f32 0.6931472, %v1735_v50 }
 0x339   : > { %1221 = vst [vmem:[%s2221_s25 + $0xe0] sm:$0xff] %v1189_v18  ;;  %v1158_v1 = vmul.f32 0.6931472, %v1737_v20 }
 0x33a   : > { %v1192_v29 = vsub.f32 %v2212_v9, %v1160_v22 }
 0x33b   : > { %v1191_v63 = vsub.f32 %v2208_v7, %v1158_v1 }
 0x33c   : > { %1224 = vst [vmem:[%s2221_s25 + $0xf8] sm:$0xff] %v1192_v29 }
 0x33d   : > { %1223 = vst [vmem:[%s2221_s25 + $0xf0] sm:$0xff] %v1191_v63 }
 0x33e PF: > { %s15_s18 = sadd.s32 1, %s1744_s18  }
 0x33f   : > { %p12_p4 = scmp.ge.s32.totalorder %s15_s18, 4  }
 0x341   :  { %14 = sbr.rel (!%p12_p4) target bundleno = 1 (0x1), region = 70 }

</bundles_post_ra>
